<compile_context>
chip_gen: v7x
topology: tpu7x:2x2x1
jax: 0.10.0
libtpu: 0.0.40
codegen_flags: <defaults>
</compile_context>

<pallas_src>
import functools
import math

import jax
import jax.numpy as jnp
from jax.experimental import pallas as pl
from jax.experimental.pallas import tpu as pltpu


def _cdiv(a, b):
    return -(-a // b)


def conv_block_kernel(x_ref, dw_w_ref, dw_b_ref, w_ref, b_ref, o_ref, *,
                      kernel_size):
    """One packed batch-block per grid step, channels packed into sublanes.

    x_ref:    (R, L)      packed input slab, R = nB * C_in rows (batch-major)
    dw_w_ref: (R, K)      depthwise taps, tiled per packed row
    dw_b_ref: (R, 1)      depthwise bias (f32)
    w_ref:    (R, R)      block-diagonal fused pointwise weight kron(I_nB, proj@pw)
    b_ref:    (R, 1)      fused pointwise bias (f32)
    o_ref:    (R, L_out)  packed output slab (exact length, no lane padding)
    """
    K = kernel_size
    L_out = o_ref.shape[-1]

    x = x_ref[...].astype(jnp.float32)        # depthwise stage in f32
    w = dw_w_ref[...].astype(jnp.float32)     # (R, K)

    # Depthwise valid conv; bias fused into tap 0 (saves a full-tile VPU add).
    # K is small & static -> unrolled.  (For large K, generate shifted views
    # with pltpu.roll so the shifts run on the XLU instead of lane selects.)
    acc = w[:, 0:1] * x[:, 0:L_out] + dw_b_ref[...].astype(jnp.float32)
    for k in range(1, K):
        acc = acc + w[:, k:k + 1] * x[:, k:k + L_out]
    h = jnp.maximum(acc, 0.0)                 # ReLU after dw_conv, (R, L_out)

    # Both 1x1 convs fused into a single block-diagonal matmul on the MXU.
    y = jnp.dot(w_ref[...], h.astype(w_ref.dtype),
                preferred_element_type=jnp.float32)
    y = y + b_ref[...].astype(jnp.float32)
    o_ref[...] = jnp.maximum(y, 0.0).astype(o_ref.dtype)   # final ReLU


def _vmem_capacity_bytes(default=64 << 20):
    try:
        info = pltpu.get_tpu_info()
        return int(getattr(info, "vmem_capacity_bytes", default))
    except Exception:
        return default


def conv_block(x, dw_w, dw_b, pw_w, pw_b, proj_w, proj_b, kernel_size):
    B, C_in, L = x.shape
    K = kernel_size
    L_out = L - K + 1
    itemsize = jnp.dtype(x.dtype).itemsize

    # ---- Chip-aware VMEM budgeting -----------------------------------------
    phys_vmem = _vmem_capacity_bytes()                 # 64 MiB v7x, 128 MiB v5e/v6e
    vmem_limit = min((phys_vmem * 3) // 4, 96 << 20)   # 48 MiB v7x, 96 MiB v5e/v6e
    block_budget = min(16 << 20, vmem_limit // 4)      # per-step live-bytes target

    # ---- Row packing: (batch, channel) collapsed onto the sublane axis -----
    sub_rows = 8 * max(1, 4 // itemsize)               # dtype-aware sublane pack
    nB_base = sub_rows // math.gcd(C_in, sub_rows)
    rows_base = nB_base * C_in
    # Live bytes per packed row: double-buffered input + double-buffered output
    # + f32 intermediates (h and the matmul result).
    row_bytes = (2 * L + 2 * L_out) * itemsize + 2 * L_out * 4
    max_rows_vmem = max(rows_base, block_budget // max(row_bytes, 1))
    max_rows = min(128, max_rows_vmem)                 # cap R at one MXU tile
    m = max(1, min(max_rows // rows_base, _cdiv(B, nB_base)))
    if B >= 2 * nB_base:                               # keep >= 2 grid steps (megacore)
        m = min(m, _cdiv(B, 2 * nB_base))
    nB = nB_base * m
    # Snap nB to a divisor of B when possible to avoid batch pad/crop copies.
    if B % nB != 0:
        for mm in range(m, 0, -1):
            cand = nB_base * mm
            if B % cand == 0 and 2 * cand >= nB:
                nB = cand
                break
    B_pad = _cdiv(B, nB) * nB
    grid_b = B_pad // nB
    R = nB * C_in

    # ---- Pack input: collapse (B, C_in) into sublane rows; no L padding ----
    if B_pad != B:
        x = jnp.pad(x, ((0, B_pad - B), (0, 0), (0, 0)))
    x2 = x.reshape(B_pad * C_in, L)

    # ---- Fuse the two 1x1 convs and pack weights for the row layout --------
    f32 = jnp.float32
    w_fused = (proj_w.astype(f32) @ pw_w.astype(f32)).astype(x.dtype)   # (C_in, C_in)
    b_fused = proj_w.astype(f32) @ pw_b.astype(f32) + proj_b.astype(f32)  # (C_in,)
    eye = jnp.eye(nB, dtype=x.dtype)
    dw_w_p = jnp.tile(dw_w.astype(x.dtype), (nB, 1))                    # (R, K)
    dw_b_p = jnp.tile(dw_b.reshape(C_in, 1).astype(f32), (nB, 1))       # (R, 1)
    w_p = jnp.kron(eye, w_fused)                                        # (R, R)
    b_p = jnp.tile(b_fused.reshape(C_in, 1), (nB, 1))                   # (R, 1)

    kernel = functools.partial(conv_block_kernel, kernel_size=K)
    const = lambda shape: pl.BlockSpec(shape, lambda b: (0, 0))

    out = pl.pallas_call(
        kernel,
        out_shape=jax.ShapeDtypeStruct((B_pad * C_in, L_out), x.dtype),
        grid_spec=pltpu.PrefetchScalarGridSpec(
            num_scalar_prefetch=0,
            grid=(grid_b,),
            in_specs=[
                pl.BlockSpec((R, L), lambda b: (b, 0)),  # packed input block
                const((R, K)),   # weights: constant index_map -> VMEM-resident
                const((R, 1)),
                const((R, R)),
                const((R, 1)),
            ],
            out_specs=pl.BlockSpec((R, L_out), lambda b: (b, 0)),
        ),
        compiler_params=pltpu.CompilerParams(
            dimension_semantics=("parallel",),
            vmem_limit_bytes=int(vmem_limit),
        ),
    )(x2, dw_w_p, dw_b_p, w_p, b_p)

    out = out.reshape(B_pad, C_in, L_out)
    if B_pad != B:
        out = out[:B]
    return out


def reference(x, dw_w, dw_b, pw_w, pw_b, proj_w, proj_b, kernel_size):
    """Pure-JAX reference mirroring the PyTorch forward (unfused)."""
    B, C_in, L = x.shape
    K = kernel_size
    L_out = L - K + 1
    h = jnp.zeros((B, C_in, L_out), jnp.float32)
    for k in range(K):
        h = h + dw_w[None, :, k:k + 1] * x[:, :, k:k + L_out]
    h = jax.nn.relu(h + dw_b[None, :, None])
    y1 = jnp.einsum('oc,bcl->bol', pw_w, h) + pw_b[None, :, None]
    y2 = jnp.einsum('co,bol->bcl', proj_w, y1) + proj_b[None, :, None]
    return jax.nn.relu(y2)


def _run_case(key, B, C_in, C_out, K, L):
    ks = jax.random.split(key, 7)
    x = jax.random.normal(ks[0], (B, C_in, L), dtype=jnp.float32)
    dw_w = jax.random.normal(ks[1], (C_in, K), dtype=jnp.float32) * 0.3
    dw_b = jax.random.normal(ks[2], (C_in,), dtype=jnp.float32) * 0.1
    pw_w = jax.random.normal(ks[3], (C_out, C_in), dtype=jnp.float32) * 0.3
    pw_b = jax.random.normal(ks[4], (C_out,), dtype=jnp.float32) * 0.1
    proj_w = jax.random.normal(ks[5], (C_in, C_out), dtype=jnp.float32) * 0.3
    proj_b = jax.random.normal(ks[6], (C_in,), dtype=jnp.float32) * 0.1

    out = conv_block(x, dw_w, dw_b, pw_w, pw_b, proj_w, proj_b, K)
    out = jax.block_until_ready(out)
    ref = reference(x, dw_w, dw_b, pw_w, pw_b, proj_w, proj_b, K)
    assert out.shape == (B, C_in, L - K + 1), out.shape
    assert jnp.allclose(out, ref, atol=1e-4, rtol=1e-4), "mismatch vs reference"


if __name__ == "__main__":
    key = jax.random.PRNGKey(0)
    k0, k1 = jax.random.split(key)

    # Primary small case (matches module spec shapes).
    _run_case(k0, B=2, C_in=4, C_out=8, K=3, L=16)
    # Ragged-batch case: exercises batch packing across >1 grid step + crop.
    _run_case(k1, B=5, C_in=4, C_out=8, K=3, L=40)

    print("KERNEL_OK")
</pallas_src>

<mosaic_0001>
module attributes {stable_mosaic.version = 11 : i64} {
  func.func @conv_block_kernel(%arg0: i32, %arg1: memref<8x16xf32, #tpu.memory_space<vmem>>, %arg2: memref<8x3xf32, #tpu.memory_space<vmem>>, %arg3: memref<8x1xf32, #tpu.memory_space<vmem>>, %arg4: memref<8x8xf32, #tpu.memory_space<vmem>>, %arg5: memref<8x1xf32, #tpu.memory_space<vmem>>, %arg6: memref<8x14xf32, #tpu.memory_space<vmem>>) attributes {dimension_semantics = [#tpu.dimension_semantics<parallel>], iteration_bounds = array<i64: 1>, scalar_prefetch = 0 : i64, scratch_operands = 0 : i64, tpu.core_type = #tpu.core_type<tc>, window_params = [{transform_indices = @transform_0, window_bounds = array<i64: 8, 16>}, {pipeline_mode = #tpu.pipeline_mode<synchronous>, transform_indices = @transform_1, window_bounds = array<i64: 8, 3>}, {pipeline_mode = #tpu.pipeline_mode<synchronous>, transform_indices = @transform_2, window_bounds = array<i64: 8, 1>}, {pipeline_mode = #tpu.pipeline_mode<synchronous>, transform_indices = @transform_3, window_bounds = array<i64: 8, 8>}, {pipeline_mode = #tpu.pipeline_mode<synchronous>, transform_indices = @transform_4, window_bounds = array<i64: 8, 1>}, {transform_indices = @transform_5, window_bounds = array<i64: 8, 14>}]} {
    %c0 = arith.constant 0 : index
    %c0_0 = arith.constant 0 : index
    %0 = vector.load %arg1[%c0, %c0_0] : memref<8x16xf32, #tpu.memory_space<vmem>>, vector<8x16xf32>
    %c0_1 = arith.constant 0 : index
    %c0_2 = arith.constant 0 : index
    %1 = vector.load %arg2[%c0_1, %c0_2] : memref<8x3xf32, #tpu.memory_space<vmem>>, vector<8x3xf32>
    %2 = vector.extract_strided_slice %1 {offsets = [0, 0], sizes = [8, 1], strides = [1, 1]} : vector<8x3xf32> to vector<8x1xf32>
    %3 = vector.extract_strided_slice %0 {offsets = [0, 0], sizes = [8, 14], strides = [1, 1]} : vector<8x16xf32> to vector<8x14xf32>
    %4 = vector.broadcast %2 : vector<8x1xf32> to vector<8x14xf32>
    %5 = arith.mulf %4, %3 : vector<8x14xf32>
    %c0_3 = arith.constant 0 : index
    %c0_4 = arith.constant 0 : index
    %6 = vector.load %arg3[%c0_3, %c0_4] : memref<8x1xf32, #tpu.memory_space<vmem>>, vector<8x1xf32>
    %7 = vector.broadcast %6 : vector<8x1xf32> to vector<8x14xf32>
    %8 = arith.addf %5, %7 : vector<8x14xf32>
    %9 = vector.extract_strided_slice %1 {offsets = [0, 1], sizes = [8, 1], strides = [1, 1]} : vector<8x3xf32> to vector<8x1xf32>
    %10 = vector.extract_strided_slice %0 {offsets = [0, 1], sizes = [8, 14], strides = [1, 1]} : vector<8x16xf32> to vector<8x14xf32>
    %11 = vector.broadcast %9 : vector<8x1xf32> to vector<8x14xf32>
    %12 = arith.mulf %11, %10 : vector<8x14xf32>
    %13 = arith.addf %8, %12 : vector<8x14xf32>
    %14 = vector.extract_strided_slice %1 {offsets = [0, 2], sizes = [8, 1], strides = [1, 1]} : vector<8x3xf32> to vector<8x1xf32>
    %15 = vector.extract_strided_slice %0 {offsets = [0, 2], sizes = [8, 14], strides = [1, 1]} : vector<8x16xf32> to vector<8x14xf32>
    %16 = vector.broadcast %14 : vector<8x1xf32> to vector<8x14xf32>
    %17 = arith.mulf %16, %15 : vector<8x14xf32>
    %18 = arith.addf %13, %17 : vector<8x14xf32>
    %cst = arith.constant 0.000000e+00 : f32
    %19 = vector.broadcast %cst : f32 to vector<8x14xf32>
    %20 = arith.maximumf %18, %19 : vector<8x14xf32>
    %c0_5 = arith.constant 0 : index
    %c0_6 = arith.constant 0 : index
    %21 = vector.load %arg4[%c0_5, %c0_6] : memref<8x8xf32, #tpu.memory_space<vmem>>, vector<8x8xf32>
    %cst_7 = arith.constant dense<0.000000e+00> : vector<8x14xf32>
    %22 = tpu.matmul %21, %20, %cst_7 {dimension_numbers = #tpu.dot_dimension_numbers<[1], [0], [0], [1], [0, 0, 1, 1], [], []>} : vector<8x8xf32>, vector<8x14xf32>, vector<8x14xf32> -> vector<8x14xf32>
    %c0_8 = arith.constant 0 : index
    %c0_9 = arith.constant 0 : index
    %23 = vector.load %arg5[%c0_8, %c0_9] : memref<8x1xf32, #tpu.memory_space<vmem>>, vector<8x1xf32>
    %24 = vector.broadcast %23 : vector<8x1xf32> to vector<8x14xf32>
    %25 = arith.addf %22, %24 : vector<8x14xf32>
    %cst_10 = arith.constant 0.000000e+00 : f32
    %26 = vector.broadcast %cst_10 : f32 to vector<8x14xf32>
    %27 = arith.maximumf %25, %26 : vector<8x14xf32>
    %c0_11 = arith.constant 0 : index
    %c0_12 = arith.constant 0 : index
    %28 = vector.load %arg6[%c0_11, %c0_12] : memref<8x14xf32, #tpu.memory_space<vmem>>, vector<8x14xf32>
    tpu.vector_store %arg6[%c0_11, %c0_12], %27 {strides = array<i32>} : memref<8x14xf32, #tpu.memory_space<vmem>>, vector<8x14xf32>,
    return
  }
  func.func @transform_0(%arg0: i32) -> (i32, i32) {
    %c0_i32 = arith.constant 0 : i32
    %c0_i32_0 = arith.constant 0 : i32
    return %arg0, %c0_i32 : i32, i32
  }
  func.func @transform_1(%arg0: i32) -> (i32, i32) {
    %c0_i32 = arith.constant 0 : i32
    %c0_i32_0 = arith.constant 0 : i32
    %c0_i32_1 = arith.constant 0 : i32
    return %c0_i32, %c0_i32_0 : i32, i32
  }
  func.func @transform_2(%arg0: i32) -> (i32, i32) {
    %c0_i32 = arith.constant 0 : i32
    %c0_i32_0 = arith.constant 0 : i32
    %c0_i32_1 = arith.constant 0 : i32
    return %c0_i32, %c0_i32_0 : i32, i32
  }
  func.func @transform_3(%arg0: i32) -> (i32, i32) {
    %c0_i32 = arith.constant 0 : i32
    %c0_i32_0 = arith.constant 0 : i32
    %c0_i32_1 = arith.constant 0 : i32
    return %c0_i32, %c0_i32_0 : i32, i32
  }
  func.func @transform_4(%arg0: i32) -> (i32, i32) {
    %c0_i32 = arith.constant 0 : i32
    %c0_i32_0 = arith.constant 0 : i32
    %c0_i32_1 = arith.constant 0 : i32
    return %c0_i32, %c0_i32_0 : i32, i32
  }
  func.func @transform_5(%arg0: i32) -> (i32, i32) {
    %c0_i32 = arith.constant 0 : i32
    %c0_i32_0 = arith.constant 0 : i32
    return %arg0, %c0_i32 : i32, i32
  }
}

</mosaic_0001>

<bundles_post_ra>
// kernel: tpu_custom_call.1
= control target key start
LH: loop header
LB: loop body
LE: loop exit
PB: predicated region body
PF: predicated region fallthrough
CT: control target
= control target key end

     0   :  { %v199_v1 = vmov 1   ;;  %v200_v2 = vmov 0   ;;  %s264_s0 = inlined_call_operand.vmem [shape: f32[8,16], index: 0, kind: input, shape index: {}]   ;;  %s265_s1 = inlined_call_operand.vmem [shape: f32[8,3], index: 1, kind: input, shape index: {}]   ;;  %s266_s2 = inlined_call_operand.vmem [shape: f32[8,1], index: 2, kind: input, shape index: {}]   ;;  %s267_s3 = inlined_call_operand.vmem [shape: f32[8,8], index: 3, kind: input, shape index: {}]   ;;  %s268_s4 = inlined_call_operand.vmem [shape: f32[8,1], index: 4, kind: input, shape index: {}]   ;;  %s269_s5 = inlined_call_operand.hbm [shape: f32[8,14], index: 5, kind: output, shape index: {}]  }
   0x1   :  { %v22_v0 = vld [vmem:[%s265_s1] sm:$0xff]  ;;  %171 = vset.pattern.permute.xlu0 %v199_v1  ;;  %173 = vset.pattern.permute.xlu1 %v200_v2 }
   0x2   :  { %10 = vsyncpa [#allocation3], 0  ;;  %37 = vperm.xlu0 %171, %v22_v0   ;;  %25 = vperm.xlu1 %173, %v22_v0   ;;  %v29_v3 = vld [vmem:[%s266_s2] sm:$0xff]  ;;  %v201_v4 = vmov 2   ;;  %v202_v6 = vmov 0.0   ;;  %vm203_vm0 = vmmov 0  }
   0x3   :  { %v21_v5 = vld [vmem:[%s264_s0] sm:$0xff]  ;;  %158 = vmatprep.subr.mxu0 %v202_v6  ;;  %160 = vmatprep.mubr.msk.f32.mxu0 %vm203_vm0, %v202_v6  ;;  %s204_s1 = smov 127   ;;  %s205_s2 = smov 126   ;;  %vm64_vm1 = vcmask 64512   ;;  %vm139_vm2 = vcmask 113664  }
   0x4   :  { %v58_v9 = vld [vmem:[%s268_s4] sm:$0xff]  ;;  %s206_s4 = smov [#allocation2]  }
   0x5   :  { %v57_v21 = vld [vmem:[%s267_s3] sm:$0xff]  ;;  %s147_s27 = sshll.u32 %s206_s4, 4  ;;  %s148_s27 = int_to_ptr.vmem [resolvable:$true] %s147_s27 }
   0x6   :  { %172 = vset.pattern.permute.xlu0 %v201_v4  ;;  %32 = vperm.xlu1 %173, %v29_v3   ;;  %s175_s28 = scalar_lea.vmem %s148_s27, 128  ;;  %p180_p1 = scmp.lt.s32.totalorder %s148_s27, %s148_s27 }
   0x7   :  { %47 = vperm.xlu0 %172, %v22_v0   ;;  %p176_p0 = scmp.ne.s32.totalorder %s148_s27, %s175_s28  ;;  %p181_p2 = scmp.lt.s32.totalorder %s175_s28, %s175_s28 }
   0x9   :  { %p182_p3 = por %p181_p2, %p180_p1 }
   0xb   :  { %174 = vset.pattern.permute.xlu0 %v200_v2  ;;  %p183_p4 = pnand %p182_p3, %p176_p0 }
  0x81   :  { %v38_v7 = vpop.permute.xlu0 %37  ;;  %v26_v12 = vpop.permute.xlu1 %25 }
  0x82   :  { %v40_v8 = vmul.f32 %v38_v7, %v21_v5  ;;  %v28_v14 = vmul.f32 %v26_v12, %v21_v5 }
  0x84   :  { %42 = vrot.lane.b32.xlu1 %v40_v8, %s204_s1 }
  0x85   :  { %v33_v13 = vpop.permute.xlu1 %32 }
  0x86   :  { %v48_v10 = vpop.permute.xlu0 %47  ;;  %v35_v16 = vadd.f32 %v33_v13, %v28_v14 }
  0x87   :  { %v50_v11 = vmul.f32 %v48_v10, %v21_v5 }
  0x88   :  { %61 = vperm.xlu1 %173, %v58_v9  }
  0x89   :  { %52 = vrot.lane.b32.xlu0 %v50_v11, %s205_s2 }
  0xf6   :  { %v43_v15 = vpop.permute.xlu1 %42 }
  0xf7   :  { %v45_v17 = vadd.f32 %v43_v15, %v35_v16 }
  0xfb   :  { %v53_v18 = vpop.permute.xlu0 %52 }
  0xfc   :  { %v55_v19 = vadd.f32 %v53_v18, %v45_v17 }
  0xfe   :  { %v56_v20 = vmax.f32 %v55_v19, 0.0 }
 0x100   :  { %159 = vmatpush3.msra.mxu0 %v56_v20 }
 0x101   :  { %161 = vmatmul.mubr.msk.f32.vlgmr.msra.gmra.mrb[0].mxu0 %vm64_vm1, %v57_v21 }
 0x107   :  { %v62_v22 = vpop.permute.xlu1 %61 }
 0x1d4   :  { %v134_v23 = vpop.f32.mrb[0].mxu0 }
 0x1d5   :  { %v135_v24 = vadd.f32 %v134_v23, %v62_v22  ;;  %v162_v25 = vpop.f32.mrb[1].mxu0 }
 0x1d7   :  { %v138_v26 = vmax.f32 %v135_v24, 0.0 }
 0x1d9   :  { %140 = vst.msk [vmem:[#allocation2] sm:$0xff] %vm139_vm2, %v138_v26 }
 0x1da   :  { %186 = shalt.err (!%p183_p4)
}
 0x1db   :  { %s187_s30 = scalar_lea.hbm %s269_s5, 128 }
 0x1dc   :  { %p188_p5 = scmp.ne.s32.totalorder %s269_s5, %s187_s30  ;;  %p191_p6 = scmp.lt.u32.totalorder %s187_s30, %s269_s5 }
 0x1de   :  { %p193_p7 = pnand %p191_p6, %p188_p5 }
 0x1e0   :  { %196 = shalt.err (!%p193_p7)
}
 0x1e1   :  { %150 = dma.vmem_to_hbm [thread:$0]  %s148_s27, 128, %s269_s5, [#allocation3]  }
 0x1e2   :  { %197 = dma.done.wait [#allocation3], 128  }
 0x1e3   :  { %198 = vsyncadd [#allocation3], 4294967168 }
 0x1e4   :  { %154 = vsyncpa [#allocation3], 1 }

</bundles_post_ra>
